<compile_context>
chip_gen: v6e
topology: v6e:2x2x1
jax: 0.10.0
libtpu: 0.0.40
codegen_flags: <defaults>
</compile_context>

<pallas_src>
import jax
import jax.numpy as jnp
from jax import lax
from jax.experimental import pallas as pl
from jax.experimental.pallas import tpu as pltpu

EPS = 1e-5
LANES = 128


def _round_up(x, m):
    return (x + m - 1) // m * m


def _cdiv(a, b):
    return -(-a // b)


# ---------------------------------------------------------------------------
# Pallas kernels
# ---------------------------------------------------------------------------
def conv_stats_kernel(p_ref, w_ref, y_ref, part_ref):
    """y = p @ w (bf16 in / f32 acc); write y in bf16, per-tile BN partials in f32."""
    y = jnp.dot(p_ref[...], w_ref[...], preferred_element_type=jnp.float32)
    y_ref[...] = y.astype(y_ref.dtype)
    part_ref[...] = jnp.concatenate(
        [jnp.sum(y, axis=0, keepdims=True),
         jnp.sum(y * y, axis=0, keepdims=True)], axis=0)[None]


def conv_pair_stats_kernel(p_ref, w_ref, q_ref, v_ref, y_ref, z_ref, part_ref):
    """Main 3x3 conv and the 1x1 projection-shortcut conv fused in one pass."""
    y = jnp.dot(p_ref[...], w_ref[...], preferred_element_type=jnp.float32)
    z = jnp.dot(q_ref[...], v_ref[...], preferred_element_type=jnp.float32)
    y_ref[...] = y.astype(y_ref.dtype)
    z_ref[...] = z.astype(z_ref.dtype)
    part_ref[...] = jnp.concatenate(
        [jnp.sum(y, axis=0, keepdims=True),
         jnp.sum(y * y, axis=0, keepdims=True),
         jnp.sum(z, axis=0, keepdims=True),
         jnp.sum(z * z, axis=0, keepdims=True)], axis=0)[None]


def bn_act_kernel(y_ref, sc_ref, sh_ref, o_ref):
    """o = relu(y * scale + shift); scale/shift fold gamma/beta/mean/var."""
    o = y_ref[...].astype(jnp.float32) * sc_ref[...] + sh_ref[...]
    o_ref[...] = jnp.maximum(o, 0.0).astype(o_ref.dtype)


def bn_add_act_kernel(y_ref, sc_ref, sh_ref, r_ref, o_ref):
    """o = relu(y*scale + shift + residual) — identity shortcut epilogue."""
    o = (y_ref[...].astype(jnp.float32) * sc_ref[...] + sh_ref[...]
         + r_ref[...].astype(jnp.float32))
    o_ref[...] = jnp.maximum(o, 0.0).astype(o_ref.dtype)


def bn_add_bn_act_kernel(y_ref, sc_ref, sh_ref, z_ref, scs_ref, shs_ref, o_ref):
    """o = relu((y*sc+sh) + (z*scs+shs)) — main BN + projection-shortcut BN."""
    o = (y_ref[...].astype(jnp.float32) * sc_ref[...] + sh_ref[...]
         + z_ref[...].astype(jnp.float32) * scs_ref[...] + shs_ref[...])
    o_ref[...] = jnp.maximum(o, 0.0).astype(o_ref.dtype)


# ---------------------------------------------------------------------------
# pallas_call wrappers (M-tiled grid, lane-dense blocks)
# ---------------------------------------------------------------------------
def _cparams():
    # single M axis: independent tiles -> "parallel" (2 TensorCores on v7x)
    return pltpu.CompilerParams(dimension_semantics=("parallel",))


def _conv_stats(p, w, tile_m, cpad):
    mpad, kpad = p.shape
    ntiles = mpad // tile_m
    return pl.pallas_call(
        conv_stats_kernel,
        out_shape=(jax.ShapeDtypeStruct((mpad, cpad), p.dtype),          # bf16
                   jax.ShapeDtypeStruct((ntiles, 2, cpad), jnp.float32)),
        grid_spec=pltpu.PrefetchScalarGridSpec(
            num_scalar_prefetch=0,
            grid=(ntiles,),
            in_specs=[pl.BlockSpec((tile_m, kpad), lambda i: (i, 0)),
                      pl.BlockSpec((kpad, cpad), lambda i: (0, 0))],
            out_specs=[pl.BlockSpec((tile_m, cpad), lambda i: (i, 0)),
                       pl.BlockSpec((1, 2, cpad), lambda i: (i, 0, 0))]),
        compiler_params=_cparams(),
    )(p, w)


def _conv_pair_stats(p, w, q, v, tile_m, cpad):
    mpad, kpad = p.shape
    kspad = q.shape[1]
    ntiles = mpad // tile_m
    return pl.pallas_call(
        conv_pair_stats_kernel,
        out_shape=(jax.ShapeDtypeStruct((mpad, cpad), p.dtype),          # bf16
                   jax.ShapeDtypeStruct((mpad, cpad), p.dtype),          # bf16
                   jax.ShapeDtypeStruct((ntiles, 4, cpad), jnp.float32)),
        grid_spec=pltpu.PrefetchScalarGridSpec(
            num_scalar_prefetch=0,
            grid=(ntiles,),
            in_specs=[pl.BlockSpec((tile_m, kpad), lambda i: (i, 0)),
                      pl.BlockSpec((kpad, cpad), lambda i: (0, 0)),
                      pl.BlockSpec((tile_m, kspad), lambda i: (i, 0)),
                      pl.BlockSpec((kspad, cpad), lambda i: (0, 0))],
            out_specs=[pl.BlockSpec((tile_m, cpad), lambda i: (i, 0)),
                       pl.BlockSpec((tile_m, cpad), lambda i: (i, 0)),
                       pl.BlockSpec((1, 4, cpad), lambda i: (i, 0, 0))]),
        compiler_params=_cparams(),
    )(p, w, q, v)


def _bn_act(y, scale, shift, tile_m, cpad, out_dtype):
    mpad = y.shape[0]
    ntiles = mpad // tile_m
    return pl.pallas_call(
        bn_act_kernel,
        out_shape=jax.ShapeDtypeStruct((mpad, cpad), out_dtype),
        grid_spec=pltpu.PrefetchScalarGridSpec(
            num_scalar_prefetch=0,
            grid=(ntiles,),
            in_specs=[pl.BlockSpec((tile_m, cpad), lambda i: (i, 0)),
                      pl.BlockSpec((1, cpad), lambda i: (0, 0)),
                      pl.BlockSpec((1, cpad), lambda i: (0, 0))],
            out_specs=pl.BlockSpec((tile_m, cpad), lambda i: (i, 0))),
        compiler_params=_cparams(),
    )(y, scale, shift)


def _bn_add_act(y, scale, shift, r, tile_m, cpad, out_dtype):
    mpad = y.shape[0]
    ntiles = mpad // tile_m
    return pl.pallas_call(
        bn_add_act_kernel,
        out_shape=jax.ShapeDtypeStruct((mpad, cpad), out_dtype),
        grid_spec=pltpu.PrefetchScalarGridSpec(
            num_scalar_prefetch=0,
            grid=(ntiles,),
            in_specs=[pl.BlockSpec((tile_m, cpad), lambda i: (i, 0)),
                      pl.BlockSpec((1, cpad), lambda i: (0, 0)),
                      pl.BlockSpec((1, cpad), lambda i: (0, 0)),
                      pl.BlockSpec((tile_m, cpad), lambda i: (i, 0))],
            out_specs=pl.BlockSpec((tile_m, cpad), lambda i: (i, 0))),
        compiler_params=_cparams(),
    )(y, scale, shift, r)


def _bn_add_bn_act(y, scale, shift, z, scale_s, shift_s, tile_m, cpad, out_dtype):
    mpad = y.shape[0]
    ntiles = mpad // tile_m
    return pl.pallas_call(
        bn_add_bn_act_kernel,
        out_shape=jax.ShapeDtypeStruct((mpad, cpad), out_dtype),
        grid_spec=pltpu.PrefetchScalarGridSpec(
            num_scalar_prefetch=0,
            grid=(ntiles,),
            in_specs=[pl.BlockSpec((tile_m, cpad), lambda i: (i, 0)),
                      pl.BlockSpec((1, cpad), lambda i: (0, 0)),
                      pl.BlockSpec((1, cpad), lambda i: (0, 0)),
                      pl.BlockSpec((tile_m, cpad), lambda i: (i, 0)),
                      pl.BlockSpec((1, cpad), lambda i: (0, 0)),
                      pl.BlockSpec((1, cpad), lambda i: (0, 0))],
            out_specs=pl.BlockSpec((tile_m, cpad), lambda i: (i, 0))),
        compiler_params=_cparams(),
    )(y, scale, shift, z, scale_s, shift_s)


# ---------------------------------------------------------------------------
# Host-side glue (bf16 im2col slab, padding, tile_m pick, tiny BN finalize)
# ---------------------------------------------------------------------------
def _im2col_3x3(x_nhwc, stride):
    """(N,H,W,C), padding=1 -> ONE lane-dense patch slab (N*Ho*Wo, 9*C)."""
    n, h, w, c = x_nhwc.shape
    xp = jnp.pad(x_nhwc, ((0, 0), (1, 1), (1, 1), (0, 0)))
    ho = (h - 1) // stride + 1
    wo = (w - 1) // stride + 1
    taps = []
    for dy in range(3):
        for dx in range(3):
            taps.append(xp[:, dy:dy + (ho - 1) * stride + 1:stride,
                           dx:dx + (wo - 1) * stride + 1:stride, :])
    patches = jnp.concatenate(taps, axis=-1)            # (N, Ho, Wo, 9*C), tap-major
    return patches.reshape(n * ho * wo, 9 * c), ho, wo


def _pad2(a, rows, cols):
    r, c = a.shape
    return jnp.pad(a, ((0, rows - r), (0, cols - c)))


def _pad1(v, n):
    return jnp.pad(v.astype(jnp.float32), (0, n - v.shape[0]))


def _vmem_budget():
    """(working-set byte budget, max tile rows) derived from the chip's VMEM."""
    try:
        cap = pltpu.get_tpu_info().vmem_capacity_bytes
    except Exception:                                    # unknown chip / interpret
        cap = 128 << 20
    budget = min(cap // 4, 20 << 20)                     # stay below scoped default
    max_tile = 2048 if cap >= (96 << 20) else 1024       # v5e/v6e vs v7x
    return budget, max_tile


def _pick_tile_m(m, per_row_bytes, weight_bytes):
    budget, max_tile = _vmem_budget()
    avail = max(budget - 2 * weight_bytes, 1 << 20)      # weights are double-buffered
    tile = avail // max(2 * per_row_bytes, 1)            # streams are double-buffered
    tile = int(max(8, min(tile, max_tile, _round_up(m, 8))))
    if m >= 16:                                          # >=2 tiles: both v7x TCs busy
        tile = min(tile, _round_up(_cdiv(m, 2), 8))
    return _round_up(tile, 8)


def _bn_scale_shift(partials, row_sum, row_sq, m_real, gamma_pad, beta_pad):
    """Cross-tile reduction of partial sums -> fused per-channel scale/shift."""
    s = jnp.sum(partials[:, row_sum, :], axis=0)
    ss = jnp.sum(partials[:, row_sq, :], axis=0)
    mean = s / m_real
    var = jnp.maximum(ss / m_real - mean * mean, 0.0)    # biased var (BatchNorm2d)
    inv = lax.rsqrt(var + EPS)
    scale = gamma_pad * inv
    shift = beta_pad - mean * scale
    return scale.reshape(1, -1), shift.reshape(1, -1)


def init_params(key, cin, cout, stride, with_shortcut):
    ks = jax.random.split(key, 9)
    p = {
        "w1": jax.random.normal(ks[0], (3, 3, cin, cout), jnp.float32) * (2.0 / (9 * cin)) ** 0.5,
        "g1": 1.0 + 0.1 * jax.random.normal(ks[1], (cout,), jnp.float32),
        "b1": 0.1 * jax.random.normal(ks[2], (cout,), jnp.float32),
        "w2": jax.random.normal(ks[3], (3, 3, cout, cout), jnp.float32) * (2.0 / (9 * cout)) ** 0.5,
        "g2": 1.0 + 0.1 * jax.random.normal(ks[4], (cout,), jnp.float32),
        "b2": 0.1 * jax.random.normal(ks[5], (cout,), jnp.float32),
    }
    if with_shortcut and (stride != 1 or cin != cout):
        p["ws"] = jax.random.normal(ks[6], (1, 1, cin, cout), jnp.float32) * (2.0 / cin) ** 0.5
        p["gs"] = 1.0 + 0.1 * jax.random.normal(ks[7], (cout,), jnp.float32)
        p["bs"] = 0.1 * jax.random.normal(ks[8], (cout,), jnp.float32)
    return p


def residual_block_forward(x_nchw, params, stride=1, with_shortcut=True,
                           compute_dtype=jnp.bfloat16, tile_m=None, out_dtype=None):
    """Pallas implementation of ResidualBlock.forward. Input/output NCHW."""
    x = jnp.transpose(x_nchw, (0, 2, 3, 1)).astype(compute_dtype)     # NHWC, bf16
    n, h, w, cin = x.shape
    cout = params["w1"].shape[-1]
    cpad = _round_up(cout, LANES)
    ho = (h - 1) // stride + 1
    wo = (w - 1) // stride + 1
    m = n * ho * wo
    out_dtype = compute_dtype if out_dtype is None else out_dtype

    proj = with_shortcut and (stride != 1 or cin != cout)
    k1pad = _round_up(9 * cin, LANES)
    k2pad = _round_up(9 * cout, LANES)
    kspad = _round_up(cin, LANES) if proj else 0

    if tile_m is None:
        itemsize = jnp.dtype(compute_dtype).itemsize
        per_row = itemsize * (max(k1pad, k2pad + kspad) + 4 * cpad)
        wbytes = itemsize * cpad * (k2pad + kspad)
        tile_m = _pick_tile_m(m, per_row, wbytes)
    tile_m = _round_up(tile_m, 8)
    mpad = _round_up(m, tile_m)

    # ---------------- stage 1: h = relu(bn1(conv1(x))) ----------------
    p1, _, _ = _im2col_3x3(x, stride)                    # (M, 9*Cin), bf16
    p1p = _pad2(p1, mpad, k1pad)
    w1p = _pad2(params["w1"].reshape(9 * cin, cout).astype(compute_dtype), k1pad, cpad)

    y1, part1 = _conv_stats(p1p, w1p, tile_m, cpad)      # y1 is bf16
    g1, b1 = _pad1(params["g1"], cpad), _pad1(params["b1"], cpad)
    sc1, sh1 = _bn_scale_shift(part1, 0, 1, m, g1, b1)
    h_slab = _bn_act(y1, sc1, sh1, tile_m, cpad, compute_dtype)

    # ---------------- stage 2: relu(bn2(conv2(h)) + shortcut) ----------------
    # (padded rows/channels of h_slab are sliced off here so they never pollute
    #  the stage-2 im2col or BN statistics)
    h_nhwc = h_slab[:m, :cout].reshape(n, ho, wo, cout)
    p2, _, _ = _im2col_3x3(h_nhwc, 1)                    # (M, 9*Cout), bf16
    p2p = _pad2(p2, mpad, k2pad)
    w2p = _pad2(params["w2"].reshape(9 * cout, cout).astype(compute_dtype), k2pad, cpad)
    g2, b2 = _pad1(params["g2"], cpad), _pad1(params["b2"], cpad)

    if proj:
        # projection shortcut: fuse the 1x1 conv (and its BN stats) into pass A
        xs = x[:, ::stride, ::stride, :][:, :ho, :wo, :].reshape(m, cin)
        xsp = _pad2(xs, mpad, kspad)
        wsp = _pad2(params["ws"].reshape(cin, cout).astype(compute_dtype), kspad, cpad)
        y2, z2, part2 = _conv_pair_stats(p2p, w2p, xsp, wsp, tile_m, cpad)
        sc2, sh2 = _bn_scale_shift(part2, 0, 1, m, g2, b2)
        gs, bs = _pad1(params["gs"], cpad), _pad1(params["bs"], cpad)
        scs, shs = _bn_scale_shift(part2, 2, 3, m, gs, bs)
        out = _bn_add_bn_act(y2, sc2, sh2, z2, scs, shs, tile_m, cpad, out_dtype)
    elif with_shortcut:
        # identity shortcut (stride == 1, cin == cout): add x directly (bf16)
        y2, part2 = _conv_stats(p2p, w2p, tile_m, cpad)
        sc2, sh2 = _bn_scale_shift(part2, 0, 1, m, g2, b2)
        xslab = _pad2(x.reshape(m, cin), mpad, cpad)
        out = _bn_add_act(y2, sc2, sh2, xslab, tile_m, cpad, out_dtype)
    else:
        y2, part2 = _conv_stats(p2p, w2p, tile_m, cpad)
        sc2, sh2 = _bn_scale_shift(part2, 0, 1, m, g2, b2)
        out = _bn_act(y2, sc2, sh2, tile_m, cpad, out_dtype)

    out = out[:m, :cout].reshape(n, ho, wo, cout)
    return jnp.transpose(out, (0, 3, 1, 2))              # -> NCHW


# ---------------------------------------------------------------------------
# Pure-JAX reference (for correctness check)
# ---------------------------------------------------------------------------
def reference_forward(x_nchw, params, stride, with_shortcut):
    x = jnp.transpose(x_nchw, (0, 2, 3, 1)).astype(jnp.float32)

    def conv(inp, w, s):
        pad = ((1, 1), (1, 1)) if w.shape[0] == 3 else ((0, 0), (0, 0))
        return lax.conv_general_dilated(
            inp, w, (s, s), pad,
            dimension_numbers=("NHWC", "HWIO", "NHWC"),
            precision=lax.Precision.HIGHEST)

    def bn(y, g, b):
        mean = jnp.mean(y, axis=(0, 1, 2), keepdims=True)
        var = jnp.mean((y - mean) ** 2, axis=(0, 1, 2), keepdims=True)
        return (y - mean) / jnp.sqrt(var + EPS) * g + b

    out = jax.nn.relu(bn(conv(x, params["w1"], stride), params["g1"], params["b1"]))
    out = bn(conv(out, params["w2"], 1), params["g2"], params["b2"])
    if with_shortcut:
        cin, cout = x.shape[-1], params["w1"].shape[-1]
        if stride != 1 or cin != cout:
            sc = bn(conv(x, params["ws"], stride), params["gs"], params["bs"])
        else:
            sc = x
        out = out + sc
    out = jax.nn.relu(out)
    return jnp.transpose(out, (0, 3, 1, 2))


def _check(name, y, y_ref, max_tol=1e-1, mean_tol=2e-2):
    # Tolerances account for the bf16 MXU path, bf16 HBM intermediates and the
    # bf16 output; structural bugs produce errors orders of magnitude larger.
    err = jnp.abs(y.astype(jnp.float32) - y_ref)
    max_err = float(jnp.max(err))
    mean_err = float(jnp.mean(err))
    assert max_err < max_tol and mean_err < mean_tol, (
        f"{name}: max_err={max_err:.4f} mean_err={mean_err:.4f}")


if __name__ == "__main__":
    key = jax.random.PRNGKey(0)
    kx, kx2, kp1, kp2 = jax.random.split(key, 4)

    # Case 1: projection shortcut (stride=2, 4 -> 8 channels), auto tile_m
    # (picks >= 2 tiles so both v7x TensorCores are exercised).
    x = jax.random.normal(kx, (2, 4, 16, 16), jnp.float32)           # NCHW
    params = init_params(kp1, 4, 8, stride=2, with_shortcut=True)
    y = jax.block_until_ready(
        residual_block_forward(x, params, stride=2, with_shortcut=True))
    y_ref = reference_forward(x, params, 2, True)
    assert y.shape == (2, 8, 8, 8)
    _check("projection-shortcut", y, y_ref)

    # Case 2: identity shortcut; tile_m=128 forces 4 M-tiles to exercise the
    # cross-tile (two-pass) BatchNorm statistics path.
    x2 = jax.random.normal(kx2, (2, 8, 16, 16), jnp.float32)         # NCHW
    params2 = init_params(kp2, 8, 8, stride=1, with_shortcut=True)
    y2 = jax.block_until_ready(
        residual_block_forward(x2, params2, stride=1, with_shortcut=True, tile_m=128))
    y2_ref = reference_forward(x2, params2, 1, True)
    assert y2.shape == (2, 8, 16, 16)
    _check("identity-shortcut", y2, y2_ref)

    # Case 3: no shortcut branch.
    y3 = jax.block_until_ready(
        residual_block_forward(x2, params2, stride=1, with_shortcut=False, tile_m=128))
    y3_ref = reference_forward(x2, params2, 1, False)
    _check("no-shortcut", y3, y3_ref)

    print("KERNEL_OK")
</pallas_src>

<mosaic_0001>
module attributes {stable_mosaic.version = 11 : i64} {
  func.func @conv_stats_kernel(%arg0: i32, %arg1: memref<64x128xbf16, #tpu.memory_space<vmem>>, %arg2: memref<128x128xbf16, #tpu.memory_space<vmem>>, %arg3: memref<64x128xbf16, #tpu.memory_space<vmem>>, %arg4: memref<1x2x128xf32, #tpu.memory_space<vmem>>) attributes {dimension_semantics = [#tpu.dimension_semantics<parallel>], iteration_bounds = array<i64: 2>, scalar_prefetch = 0 : i64, scratch_operands = 0 : i64, tpu.core_type = #tpu.core_type<tc>, window_params = [{transform_indices = @transform_0, window_bounds = array<i64: 64, 128>}, {pipeline_mode = #tpu.pipeline_mode<synchronous>, transform_indices = @transform_1, window_bounds = array<i64: 128, 128>}, {transform_indices = @transform_2, window_bounds = array<i64: 64, 128>}, {transform_indices = @transform_3, window_bounds = array<i64: 1, 2, 128>}]} {
    %c0 = arith.constant 0 : index
    %c0_0 = arith.constant 0 : index
    %0 = vector.load %arg1[%c0, %c0_0] : memref<64x128xbf16, #tpu.memory_space<vmem>>, vector<64x128xbf16>
    %c0_1 = arith.constant 0 : index
    %c0_2 = arith.constant 0 : index
    %1 = vector.load %arg2[%c0_1, %c0_2] : memref<128x128xbf16, #tpu.memory_space<vmem>>, vector<128x128xbf16>
    %cst = arith.constant dense<0.000000e+00> : vector<64x128xf32>
    %2 = tpu.matmul %0, %1, %cst {dimension_numbers = #tpu.dot_dimension_numbers<[1], [0], [0], [1], [0, 0, 1, 1], [], []>} : vector<64x128xbf16>, vector<128x128xbf16>, vector<64x128xf32> -> vector<64x128xf32>
    %3 = arith.truncf %2 : vector<64x128xf32> to vector<64x128xbf16>
    %c0_3 = arith.constant 0 : index
    %c0_4 = arith.constant 0 : index
    %4 = vector.load %arg3[%c0_3, %c0_4] : memref<64x128xbf16, #tpu.memory_space<vmem>>, vector<64x128xbf16>
    tpu.vector_store %arg3[%c0_3, %c0_4], %3 {strides = array<i32>} : memref<64x128xbf16, #tpu.memory_space<vmem>>, vector<64x128xbf16>,
    %cst_5 = arith.constant dense<0.000000e+00> : vector<128xf32>
    %5 = vector.multi_reduction <add>, %2, %cst_5 [0] : vector<64x128xf32> to vector<128xf32>
    %6 = vector.shape_cast %5 : vector<128xf32> to vector<1x128xf32>
    %7 = arith.mulf %2, %2 : vector<64x128xf32>
    %cst_6 = arith.constant dense<0.000000e+00> : vector<128xf32>
    %8 = vector.multi_reduction <add>, %7, %cst_6 [0] : vector<64x128xf32> to vector<128xf32>
    %9 = vector.shape_cast %8 : vector<128xf32> to vector<1x128xf32>
    %10 = tpu.concatenate %6, %9 in 0 : vector<1x128xf32>, vector<1x128xf32> -> vector<2x128xf32>
    %11 = vector.shape_cast %10 : vector<2x128xf32> to vector<1x2x128xf32>
    %c0_7 = arith.constant 0 : index
    %c0_8 = arith.constant 0 : index
    %c0_9 = arith.constant 0 : index
    %12 = vector.load %arg4[%c0_7, %c0_8, %c0_9] : memref<1x2x128xf32, #tpu.memory_space<vmem>>, vector<1x2x128xf32>
    tpu.vector_store %arg4[%c0_7, %c0_8, %c0_9], %11 {strides = array<i32>} : memref<1x2x128xf32, #tpu.memory_space<vmem>>, vector<1x2x128xf32>,
    return
  }
  func.func @transform_0(%arg0: i32) -> (i32, i32) {
    %c0_i32 = arith.constant 0 : i32
    %c0_i32_0 = arith.constant 0 : i32
    return %arg0, %c0_i32 : i32, i32
  }
  func.func @transform_1(%arg0: i32) -> (i32, i32) {
    %c0_i32 = arith.constant 0 : i32
    %c0_i32_0 = arith.constant 0 : i32
    %c0_i32_1 = arith.constant 0 : i32
    return %c0_i32, %c0_i32_0 : i32, i32
  }
  func.func @transform_2(%arg0: i32) -> (i32, i32) {
    %c0_i32 = arith.constant 0 : i32
    %c0_i32_0 = arith.constant 0 : i32
    return %arg0, %c0_i32 : i32, i32
  }
  func.func @transform_3(%arg0: i32) -> (i32, i32, i32) {
    %c0_i32 = arith.constant 0 : i32
    %c0_i32_0 = arith.constant 0 : i32
    %c0_i32_1 = arith.constant 0 : i32
    return %arg0, %c0_i32, %c0_i32_0 : i32, i32, i32
  }
}

</mosaic_0001>

<bundles_post_ra>
// kernel: tpu_custom_call.1
= control target key start
LH: loop header
LB: loop body
LE: loop exit
PB: predicated region body
PF: predicated region fallthrough
CT: control target
= control target key end

     0   :  { %9 = vsyncpa [#allocation3], 0  ;;  %s1210_s0 = inlined_call_operand.hbm [shape: bf16[128,128], index: 0, kind: input, shape index: {}]   ;;  %s1211_s1 = inlined_call_operand.hbm [shape: bf16[128,128], index: 1, kind: input, shape index: {}]   ;;  %s1212_s2 = inlined_call_operand.hbm [shape: bf16[128,128], index: 2, kind: output, shape index: {0}]   ;;  %s1213_s3 = inlined_call_operand.hbm [shape: f32[2,2,128], index: 3, kind: output, shape index: {1}]  }
   0x1   :  { %11 = vsyncpa [#allocation3 + $0x1], 0 }
   0x2   :  { %12 = vsyncpa [#allocation6], 0 }
   0x3   :  { %13 = vsyncpa [#allocation4], 0 }
   0x4   :  { %15 = vsyncpa [#allocation4 + $0x1], 0 }
   0x5   :  { %16 = vsyncpa [#allocation9], 0 }
   0x6   :  { %18 = vsyncpa [#allocation9 + $0x1], 0  ;;  %s987_s12 = smov 0   ;;  %s989_s13 = smov 0  }
   0x7   :  { %s991_s14 = smov 0   ;;  %s993_s15 = smov 0  }
   0x8 LB: > { %s1008_s16 = sadd.s32 4294967295, %s957_s15   ;;  %s603_s17 = sadd.s32 4294967294, %s957_s15   ;;  %s957_s15 = sphi %s993_s15, %s1235_s15   ;;  %s953_s14 = sphi %s991_s14, %s1234_s14   ;;  %s949_s13 = sphi %s989_s13, %s1233_s13   ;;  %s945_s12 = sphi %s987_s12, %s1232_s12  }
   0x9   : > { %p44_p0 = scmp.ne.s32.totalorder %s949_s13, %s945_s12  ;;  %p1214_p1 = scmp.eq.s32.totalorder %s1008_s16, 0 }
   0xa   : > { %p95_p3 = scmp.eq.s32.totalorder %s603_s17, 1  ;;  %p604_p5 = scmp.ge.s32.totalorder %s957_s15, 1 }
   0xb   : > { %p1017_p4 = por %p1214_p1, %p44_p0  ;;  %p128_p7 = scmp.lt.s32.totalorder %s957_s15, 3 }
   0xc   : > { %p1022_p6 = por %p95_p3, %p44_p0  ;;  %s959_s21 = smov [#allocation5]  }
   0xd   : > { %s1218_s18 = scalar_select %p1017_p4, 1, 0 }
   0xe   : > { %s1219_s19 = scalar_select %p1022_p6, 1, 0 }
   0xf   : > { %p1027_p8 = pnand %p604_p5, %p128_p7  ;;  %s140_s22 = sshll.u32 %s959_s21, 4  ;;  %s141_s22 = int_to_ptr.vmem [resolvable:$true] %s140_s22 }
  0x10   : > { %s1041_s24 = sadd.s32 1, %s957_s15   ;;  %s31_s25 = sadd.s32 1, %s953_s14 }
  0x11   : > { %s1220_s20 = scalar_select %p1027_p8, 1, 0 }
  0x12   : > { %p737_p9 = pneg %p1027_p8  ;;  %s28_s26 = ssub.s32 %s957_s15, %s1041_s24 }
  0x13   : > { %s816_s27 = scalar_lea.vmem %s141_s22, 1024  ;;  %p824_p5 = scmp.lt.s32.totalorder %s141_s22, %s141_s22 }
  0x14   : > { %p1036_p11 = pnand %p737_p9, %p1214_p1  ;;  %p817_p13 = scmp.ne.s32.totalorder %s141_s22, %s816_s27 }
  0x15   : > { %p825_p7 = scmp.lt.s32.totalorder %s816_s27, %s816_s27 }
  0x16   : > { %p807_p12 = pneg %p1036_p11 }
  0x17   : > { %p826_p10 = por %p825_p7, %p824_p5 }
  0x18   : > { %p819_p0 = pnand %p817_p13, %p807_p12 }
  0x1a   : > { %p820_p3 = pneg %p819_p0 }
  0x1c   : > { %p827_p2 = pnand %p826_p10, %p820_p3 }
  0x1e   : > { %830 = shalt.err (!%p827_p2)
}
  0x1f   : > { %s960_s28 = smov 64   ;;  %s961_s29 = smov 4  }
  0x20   : > { %740 = dma.hbm_to_vmem [thread:$0]  (!%p1036_p11), %s1211_s1, 1024, %s141_s22, [#allocation6], %s960_s28, %s960_s28, %s961_s29  }
  0x21   : > { %p29_p2 = scmp.eq.s32.totalorder %s28_s26, 0  ;;  %p38_p9 = scmp.ne.s32.totalorder %s953_s14, %s949_s13 }
  0x22   : > { %p39_p10 = scmp.eq.s32.totalorder %s957_s15, 0  ;;  %p753_p12 = scmp.lt.s32.totalorder %s957_s15, 2 }
  0x23   : > { %s1061_s5 = scalar_select %p29_p2, %s953_s14, %s31_s25  }
  0x24   : > { %p40_p13 = por %p39_p10, %p38_p9  ;;  %p1222_p0 = scmp.eq.s32.totalorder %s1008_s16, 1 }
  0x25   : > { %s154_s7 = sand.u32 1, %s953_s14   ;;  %s642_s8 = sshll.u32 %s957_s15, 9 }
  0x26   : > { %p1065_p3 = por %p1222_p0, %p38_p9  ;;  %s607_s9 = sshll.u32 %s154_s7, 5 }
  0x27   : > { %s1074_s17 = scalar_lea.hbm %s1210_s0, %s642_s8  ;;  %s158_s21 = scalar_lea.vmem [#allocation2], %s607_s9 }
  0x28   : > { %s1223_s6 = scalar_select %p1065_p3, 1, 0 }
  0x29   : > { %s165_s22 = sshll.u32 %s158_s21, 4  ;;  %p1076_p11 = pnand %p753_p12, %p40_p13  ;;  %s1080_s22 = int_to_ptr.vmem [resolvable:$true] %s165_s22 }
  0x2a   : > { %s1082_s25 = scalar_lea.sflag [#allocation3], %s154_s7  ;;  %s831_s26 = scalar_lea.hbm %s1074_s17, 512 }
  0x2b   : > { %p832_p5 = scmp.ne.s32.totalorder %s1074_s17, %s831_s26  ;;  %p833_p7 = pneg %p1076_p11 }
  0x2c   : > { %s836_s4 = scalar_lea.hbm %s1210_s0, 1024  ;;  %p837_p10 = scmp.lt.s32.totalorder %s1074_s17, %s1210_s0 }
  0x2d   : > { %p834_p2 = pnand %p833_p7, %p832_p5  ;;  %p838_p12 = scmp.lt.s32.totalorder %s836_s4, %s831_s26 }
  0x2f   : > { %p835_p9 = pneg %p834_p2  ;;  %p839_p13 = por %p838_p12, %p837_p10 }
  0x31   : > { %p840_p0 = pnand %p839_p13, %p835_p9 }
  0x33   : > { %843 = shalt.err (!%p840_p0)
}
  0x34   : > { %s844_s7 = scalar_lea.vmem %s1080_s22, 512  ;;  %s962_s10 = smov [#allocation2]  }
  0x35   : > { %p845_p1 = scmp.ne.s32.totalorder %s1080_s22, %s844_s7  ;;  %s849_s11 = sshll.u32 %s962_s10, 4  ;;  %s850_s11 = int_to_ptr.vmem [resolvable:$false] %s849_s11 }
  0x36   : > { %s851_s21 = scalar_lea.vmem %s850_s11, 1024  ;;  %p852_p2 = scmp.lt.s32.totalorder %s1080_s22, %s850_s11 }
  0x37   : > { %p847_p6 = pnand %p845_p1, %p833_p7  ;;  %p853_p3 = scmp.lt.s32.totalorder %s851_s21, %s844_s7 }
  0x39   : > { %p848_p5 = pneg %p847_p6  ;;  %p854_p4 = por %p853_p3, %p852_p2 }
  0x3b   : > { %p855_p8 = pnand %p854_p4, %p848_p5 }
  0x3d   : > { %858 = shalt.err (!%p855_p8)
}
  0x3e   : > { %744 = dma.hbm_to_vmem [thread:$0]  (!%p1076_p11), %s1074_s17, 512, %s1080_s22, %s1082_s25, %s960_s28, %s960_s28, %s961_s29  }
  0x3f   : > { %p1225_p1 = scmp.ne.s32.totalorder %s1220_s20, 0 }
  0x40   : > { %s1109_s26 = sand.u32 (!%p1225_p1), 1, %s949_s13   ;;  %p1226_p4 = scmp.ne.s32.totalorder (!%p1225_p1), %s1218_s18, 0 }
  0x41   : > { %177 = sbr.rel (%p1225_p1) target bundleno = 359 (0x167), region = 28  ;;  %s611_s27 = sshll.u32 (!%p1225_p1), %s1109_s26, 5 }
  0x42   : > { %s180_s30 = scalar_lea.sflag (!%p1225_p1), [#allocation3], %s1109_s26  ;;  %s1115_s23 = scalar_lea.vmem (!%p1225_p1), [#allocation2], %s611_s27 }
  0x46   : > { %928 = dma.done.wait (%p1226_p4), %s180_s30, 512  }
  0x47   : > { %930 = vsyncadd (%p1226_p4), %s180_s30, 4294966784  ;;  %p1227_p6 = scmp.eq.s32.totalorder %s1008_s16, 0 }
  0x49   : > { %932 = dma.done.wait (%p1227_p6), [#allocation6], 1024   ;;  %p1228_p8 = pmov %p1227_p6 }
  0x4a   : > { %v793_v0 = vld [vmem:[#allocation5 + $0x38] sm:$0xff]   ;;  %v794_v1 = vld [vmem:[#allocation5 + $0x30] sm:$0xff]   ;;  %v795_v2 = vld [vmem:[#allocation5 + $0x28] sm:$0xff]   ;;  %s207_s18 = scalar_lea.vmem [#allocation7], %s611_s27  ;;  %s651_s28 = sshll.u32 %s1008_s16, 9 }
  0x4b   : > { %934 = vsyncadd (%p1228_p8), [#allocation6], 4294966272  ;;  %687 = vmatprep.subr.bf16.mxu0 %v793_v0  ;;  %711 = vmatprep.subr.bf16.mxu1 %v793_v0  ;;  %v796_v3 = vld [vmem:[#allocation5 + $0x20] sm:$0xff]   ;;  %v803_v5 = vld [vmem:[%s1115_s23 + $0x10] sm:$0xff]   ;;  %s475_s20 = sshll.u32 %s207_s18, 4  ;;  %s1140_s22 = scalar_lea.hbm %s1212_s2, %s651_s28  ;;  %s1134_s20 = int_to_ptr.vmem [resolvable:$true] %s475_s20 }
  0x4c   : > { %688 = vmatpush3.bf16.msra.mxu0 %v793_v0  ;;  %719 = vmatpush3.bf16.msra.mxu1 %v793_v0  ;;  %v801_v4 = vld [vmem:[%s1115_s23] sm:$0xff]   ;;  %v797_v6 = vld [vmem:[#allocation5 + $0x18] sm:$0xff]   ;;  %v798_v7 = vld [vmem:[#allocation5 + $0x10] sm:$0xff]   ;;  %s457_s25 = scalar_lea.sflag [#allocation4], %s1109_s26  ;;  %s859_s4 = scalar_lea.vmem %s1134_s20, 512 }
  0x4d   : > { %689 = vmatprep.subr.bf16.mxu0 %v794_v1  ;;  %712 = vmatprep.subr.bf16.mxu1 %v794_v1  ;;  %v799_v8 = vld [vmem:[#allocation5 + $0x8] sm:$0xff]   ;;  %v800_v9 = vld [vmem:[#allocation5] sm:$0xff]   ;;  %v804_v11 = vld [vmem:[%s1115_s23 + $0x18] sm:$0xff]   ;;  %p860_p3 = scmp.ne.s32.totalorder %s1134_s20, %s859_s4  ;;  %p1229_p11 = scmp.ne.s32.totalorder %s1223_s6, 0 }
  0x4e   : > { %703 = vmatprep.mubr.bf16.mxu0 %v801_v4  ;;  %707 = vmatprep.mubr.bf16.mxu1 %v803_v5  ;;  %v802_v10 = vld [vmem:[%s1115_s23 + $0x8] sm:$0xff]   ;;  %s963_s8 = smov [#allocation7]  }
  0x4f   : > { %p861_p7 = pnand %p860_p3, %p1229_p11  ;;  %s863_s9 = sshll.u32 %s963_s8, 4  ;;  %s864_s9 = int_to_ptr.vmem [resolvable:$false] %s863_s9 }
  0x50   : > { %690 = vmatpush3.bf16.msra.mxu0 %v794_v1  ;;  %720 = vmatpush3.bf16.msra.mxu1 %v794_v1  ;;  %s865_s7 = scalar_lea.vmem %s864_s9, 1024  ;;  %p866_p10 = scmp.lt.s32.totalorder %s1134_s20, %s864_s9 }
  0x51   : > { %691 = vmatprep.subr.bf16.mxu0 %v795_v2  ;;  %713 = vmatprep.subr.bf16.mxu1 %v795_v2  ;;  %p862_p9 = pneg %p861_p7  ;;  %p867_p12 = scmp.lt.s32.totalorder %s865_s7, %s859_s4 }
  0x53   : > { %p868_p13 = por %p867_p12, %p866_p10 }
  0x54   : > { %692 = vmatpush3.bf16.msra.mxu0 %v795_v2  ;;  %721 = vmatpush3.bf16.msra.mxu1 %v795_v2 }
  0x55   : > { %693 = vmatprep.subr.bf16.mxu0 %v796_v3  ;;  %714 = vmatprep.subr.bf16.mxu1 %v796_v3  ;;  %p869_p0 = pnand %p868_p13, %p862_p9 }
  0x58   : > { %694 = vmatpush3.bf16.msra.mxu0 %v796_v3  ;;  %722 = vmatpush3.bf16.msra.mxu1 %v796_v3 }
  0x59   : > { %695 = vmatprep.subr.bf16.mxu0 %v797_v6  ;;  %715 = vmatprep.subr.bf16.mxu1 %v797_v6 }
  0x5c   : > { %696 = vmatpush3.bf16.msra.mxu0 %v797_v6  ;;  %723 = vmatpush3.bf16.msra.mxu1 %v797_v6 }
  0x5d   : > { %697 = vmatprep.subr.bf16.mxu0 %v798_v7  ;;  %716 = vmatprep.subr.bf16.mxu1 %v798_v7 }
  0x60   : > { %698 = vmatpush3.bf16.msra.mxu0 %v798_v7  ;;  %724 = vmatpush3.bf16.msra.mxu1 %v798_v7 }
  0x61   : > { %699 = vmatprep.subr.bf16.mxu0 %v799_v8  ;;  %717 = vmatprep.subr.bf16.mxu1 %v799_v8 }
  0x64   : > { %700 = vmatpush3.bf16.msra.mxu0 %v799_v8  ;;  %725 = vmatpush3.bf16.msra.mxu1 %v799_v8 }
  0x65   : > { %701 = vmatprep.subr.bf16.mxu0 %v800_v9  ;;  %718 = vmatprep.subr.bf16.mxu1 %v800_v9 }
  0x68   : > { %702 = vmatpush3.bf16.msra.mxu0 %v800_v9  ;;  %726 = vmatpush3.bf16.msra.mxu1 %v800_v9 }
  0x6b   : > { %704 = vmatmul.mubr.bf16.vlgmr.msra.gmra.mxu0 %v802_v10  ;;  %708 = vmatmul.mubr.bf16.vlgmr.msra.gmra.mxu1 %v804_v11 }
 0x12b   : > { %v705_v12 = vpop.f32.mrf.mxu0  ;;  %v1129_v13 = vpop.f32.mrf.mxu1 }
 0x12c   : > { %v434_v27 = vmul.f32 %v705_v12, %v705_v12 }
 0x12d   : > { %v348_v14 = vpop.f32.mrf.mxu0  ;;  %v364_v15 = vpop.f32.mrf.mxu1 }
 0x12e   : > { %v432_v20 = vmul.f32 %v348_v14, %v348_v14 }
 0x12f   : > { %v706_v16 = vpop.f32.mrf.mxu0  ;;  %v710_v17 = vpop.f32.mrf.mxu1 }
 0x130   : > { %v660_v18 = vpack.c.bf16 %v706_v16, %v705_v12  ;;  %v670_v19 = vpack.c.bf16 %v710_v17, %v1129_v13 }
 0x131   : > { %v351_v21 = vpop.f32.mrf.mxu0  ;;  %v367_v22 = vpop.f32.mrf.mxu1 }
 0x132   : > { %672 = vst [vmem:[%s207_s18 + $0x8] sm:$0xff] %v660_v18   ;;  %v655_v23 = vpack.c.bf16 %v351_v21, %v348_v14  ;;  %v419_v24 = vadd.f32 %v351_v21, %v348_v14  ;;  %v433_v25 = vmul.f32 %v351_v21, %v351_v21  ;;  %674 = vst [vmem:[%s207_s18 + $0x18] sm:$0xff] %v670_v19  }
 0x133   : > { %v665_v26 = vpack.c.bf16 %v367_v22, %v364_v15 }
 0x134   : > { %656 = vst [vmem:[%s207_s18] sm:$0xff] %v655_v23   ;;  %v420_v28 = vadd.f32 %v705_v12, %v419_v24  ;;  %v440_v29 = vadd.f32 %v433_v25, %v432_v20 }
 0x135   : > { %673 = vst [vmem:[%s207_s18 + $0x10] sm:$0xff] %v665_v26  }
 0x136   : > { %872 = shalt.err (!%p869_p0)
}
 0x137   : > { %s873_s10 = scalar_lea.hbm %s1140_s22, 512  ;;  %s877_s27 = scalar_lea.hbm %s1212_s2, 1024 }
 0x138   : > { %p874_p5 = scmp.ne.s32.totalorder %s1140_s22, %s873_s10  ;;  %p878_p4 = scmp.lt.s32.totalorder %s1140_s22, %s1212_s2 }
 0x139   : > { %p879_p6 = scmp.lt.s32.totalorder %s877_s27, %s873_s10 }
 0x13a   : > { %p875_p2 = pnand %p874_p5, %p1229_p11 }
 0x13b   : > { %p880_p8 = por %p879_p6, %p878_p4 }
 0x13c   : > { %p876_p1 = pneg %p875_p2 }
 0x13e   : > { %p881_p3 = pnand %p880_p8, %p876_p1 }
 0x140   : > { %884 = shalt.err (!%p881_p3)
}
 0x141   : > { %s964_s18 = smov 64   ;;  %s965_s28 = smov 4   ;;  %v435_v30 = vmul.f32 %v706_v16, %v706_v16  ;;  %v441_v31 = vadd.f32 %v440_v29, %v434_v27  ;;  %v421_v32 = vadd.f32 %v706_v16, %v420_v28  ;;  %v436_v33 = vmul.f32 %v364_v15, %v364_v15 }
 0x142   : > { %733 = dma.vmem_to_hbm [thread:$0]  (%p1229_p11), %s1134_s20, 512, %s1140_s22, %s457_s25, %s964_s18, %s964_s18, %s965_s28   ;;  %v437_v37 = vmul.f32 %v367_v22, %v367_v22  ;;  %v438_v39 = vmul.f32 %v1129_v13, %v1129_v13  ;;  %v439_v42 = vmul.f32 %v710_v17, %v710_v17  ;;  %vm453_vm0 = vcmask 1040384  }
 0x143   : > { %v422_v34 = vadd.f32 %v421_v32, %v364_v15  ;;  %v442_v35 = vadd.f32 %v441_v31, %v435_v30  ;;  %s614_s20 = sshll.u32 %s1109_s26, 1  ;;  %s639_s29 = sshll.u32 %s1008_s16, 5 }
 0x144   : > { %s214_s17 = scalar_lea.vmem [#allocation8], %s614_s20  ;;  %s1173_s8 = scalar_lea.hbm %s1213_s3, %s639_s29 }
 0x145   : > { %v423_v36 = vadd.f32 %v422_v34, %v367_v22  ;;  %v443_v38 = vadd.f32 %v442_v35, %v436_v33  ;;  %s491_s22 = sshll.u32 %s214_s17, 4  ;;  %s462_s9 = scalar_lea.sflag [#allocation9], %s1109_s26  ;;  %s492_s22 = int_to_ptr.vmem [resolvable:$true] %s491_s22 }
 0x146   : > { %s885_s7 = scalar_lea.vmem %s492_s22, 32  ;;  %s966_s16 = smov [#allocation8]  }
 0x147   : > { %v424_v40 = vadd.f32 %v1129_v13, %v423_v36  ;;  %v444_v41 = vadd.f32 %v443_v38, %v437_v37  ;;  %p886_p7 = scmp.ne.s32.totalorder %s492_s22, %s885_s7  ;;  %s889_s10 = sshll.u32 %s966_s16, 4  ;;  %s890_s10 = int_to_ptr.vmem [resolvable:$false] %s889_s10 }
 0x148   : > { %s891_s11 = scalar_lea.vmem %s890_s10, 64  ;;  %p892_p12 = scmp.lt.s32.totalorder %s492_s22, %s890_s10 }
 0x149   : > { %v425_v43 = vadd.f32 %v710_v17, %v424_v40  ;;  %v445_v44 = vadd.f32 %v444_v41, %v438_v39  ;;  %p887_p9 = pnand %p886_p7, %p1229_p11  ;;  %p893_p13 = scmp.lt.s32.totalorder %s891_s11, %s885_s7 }
 0x14b   : > { %v426_v45 = vrot.slane %v425_v43, 4  ;;  %v446_v46 = vadd.f32 %v445_v44, %v439_v42  ;;  %p888_p10 = pneg %p887_p9  ;;  %p894_p0 = por %p893_p13, %p892_p12 }
 0x14d   : > { %v427_v47 = vadd.f32 %v426_v45, %v425_v43  ;;  %v447_v48 = vrot.slane %v446_v46, 4  ;;  %p895_p5 = pnand %p894_p0, %p888_p10 }
 0x14f   : > { %v428_v49 = vrot.slane %v427_v47, 2  ;;  %v448_v50 = vadd.f32 %v447_v48, %v446_v46 }
 0x151   : > { %v429_v51 = vadd.f32 %v428_v49, %v427_v47  ;;  %v449_v52 = vrot.slane %v448_v50, 2 }
 0x153   : > { %v430_v53 = vrot.slane %v429_v51, 1  ;;  %v450_v54 = vadd.f32 %v449_v52, %v448_v50 }
 0x155   : > { %v451_v55 = vrot.slane %v450_v54, 1  ;;  %v431_v56 = vadd.f32 %v430_v53, %v429_v51 }
 0x157   : > { %v452_v57 = vadd.f32 %v451_v55, %v450_v54 }
 0x159   : > { %v454_v58 = vsel %vm453_vm0, %v431_v56, %v452_v57 }
 0x15a   : > { %455 = vst [vmem:[%s214_s17] sm:$0x3] %v454_v58 }
 0x15b   : > { %898 = shalt.err (!%p895_p5)
}
 0x15c   : > { %s899_s21 = scalar_lea.hbm %s1173_s8, 32  ;;  %s903_s30 = scalar_lea.hbm %s1213_s3, 64 }
 0x15d   : > { %p900_p2 = scmp.ne.s32.totalorder %s1173_s8, %s899_s21  ;;  %p904_p6 = scmp.lt.s32.totalorder %s1173_s8, %s1213_s3 }
 0x15e   : > { %p905_p8 = scmp.lt.s32.totalorder %s903_s30, %s899_s21 }
 0x15f   : > { %p901_p1 = pnand %p900_p2, %p1229_p11 }
 0x160   : > { %p906_p3 = por %p905_p8, %p904_p6 }
 0x161   : > { %p902_p4 = pneg %p901_p1 }
 0x163   : > { %p907_p7 = pnand %p906_p3, %p902_p4 }
 0x165   : > { %910 = shalt.err (!%p907_p7)
}
 0x166   : > { %734 = dma.vmem_to_hbm [thread:$0]  (%p1229_p11), %s492_s22, 32, %s1173_s8, %s462_s9  }
 0x167 PF: > { %s503_s28 = sand.u32 1, %s945_s12   ;;  %p1230_p9 = scmp.ne.s32.totalorder %s1219_s19, 0 }
 0x168   : > { %p1231_p10 = scmp.ge.s32.totalorder %s957_s15, 2  ;;  %s504_s20 = scalar_lea.sflag [#allocation4], %s503_s28 }
 0x16a   : > { %p746_p12 = pnand %p1231_p10, %p1230_p9 }
 0x16c   : > { %p747_p13 = pneg %p746_p12 }
 0x16e   : > { %936 = dma.done.wait (%p747_p13), %s504_s20, 512  }
 0x16f   : > { %938 = vsyncadd (%p747_p13), %s504_s20, 4294966784  ;;  %s513_s29 = scalar_lea.sflag [#allocation9], %s503_s28 }
 0x170   : > { %940 = dma.done.wait (%p747_p13), %s513_s29, 32  }
 0x171   : > { %942 = vsyncadd (%p747_p13), %s513_s29, 4294967264  ;;  %p21_p11 = scmp.ge.s32.totalorder %s1041_s24, 4   ;;  %s1232_s12 = smov %s949_s13 }
 0x172   : > { %s1233_s13 = smov %s953_s14  ;;  %s1234_s14 = smov %s1061_s5 }
 0x173   : > { %s1235_s15 = smov %s1041_s24  ;;  %23 = sbr.rel (!%p21_p11) target bundleno = 8 (0x8), region = 94 }
 0x178   :  { %518 = vsyncpa [#allocation3], 1 }
 0x179   :  { %520 = vsyncpa [#allocation3 + $0x1], 1 }
 0x17a   :  { %521 = vsyncpa [#allocation6], 1 }
 0x17b   :  { %522 = vsyncpa [#allocation4], 1 }
 0x17c   :  { %524 = vsyncpa [#allocation4 + $0x1], 1 }
 0x17d   :  { %525 = vsyncpa [#allocation9], 1 }
 0x17e   :  { %527 = vsyncpa [#allocation9 + $0x1], 1 }

</bundles_post_ra>
